<compile_context>
chip_gen: v7x
topology: tpu7x:2x2x1
jax: 0.10.0
libtpu: 0.0.40
codegen_flags: <defaults>
</compile_context>

<pallas_src>
import jax
import jax.numpy as jnp
from jax.experimental import pallas as pl
from jax.experimental.pallas import tpu as pltpu


# ---------------------------------------------------------------------------
# Fused GATLayer kernel: one grid step == one batch element.
# ---------------------------------------------------------------------------
def _gat_layer_kernel(x_ref, p_ref, mask_ref,
                      w1_ref, b1_ref, w2_ref, b2_ref,
                      xnew_ref, pnew_ref):
    H = x_ref.shape[-1]
    IDX_VG = H        # value pre-contracted with the gate's "out" weight
    IDX_SK = H + 1    # key-side additive score (+ bscore)
    IDX_GP = H + 2    # gate term applied to P (+ bgate)

    def relation_attention(P, X, keep_col, w_ref, b_ref):
        # P: (Mp, H) queries/residual; X: (Mx, H) keys/values;
        # keep_col: (Mx, 1) 1=keep / 0=mask, or None.
        Mx = X.shape[0]
        w = w_ref[...]                      # (H, 128) bf16 fused weight
        b = b_ref[...]                      # (1, 128) f32 fused bias

        # ONE fused projection matmul for both operands (bf16 MXU, f32 acc).
        xp = jnp.concatenate([X, P], axis=0).astype(jnp.bfloat16)   # (Mx+Mp, H)
        proj = jnp.dot(xp, w, preferred_element_type=jnp.float32) + b
        proj_x = proj[:Mx]                  # (Mx, 128): [V | V@wg_o | sk | gP]
        proj_p = proj[Mx:]                  # (Mp, 128): only the gate-P column used

        # Key-side score column; query-side score cancels in the softmax and
        # was dropped at parameter-folding time.
        sk = proj_x[:, IDX_SK:IDX_SK + 1]                       # (Mx, 1)
        if keep_col is not None:
            sk = jnp.where(keep_col > 0.0, sk, -1000000000.0)
        smax = jnp.max(sk, axis=0, keepdims=True)
        e = jnp.exp(sk - smax)
        attn = e * pl.reciprocal(jnp.sum(e, axis=0, keepdims=True),
                                 approx=True)                    # (Mx, 1)

        # Attention weights are identical for every query row, so attn@V is a
        # single f32 weighted reduction over the key axis; the value output and
        # the gate's out-term come out of the same reduction.
        ov = jnp.sum(attn * proj_x, axis=0, keepdims=True)       # (1, 128)

        out = ov[:, 0:H] + P                                     # (Mp, H)
        g = jax.nn.sigmoid(ov[:, IDX_VG:IDX_VG + 1]
                           + proj_p[:, IDX_GP:IDX_GP + 1])       # (Mp, 1)
        return g * out + (1.0 - g) * P

    x = x_ref[0]            # (Lx, H) f32
    p = p_ref[0]            # (Lp, H) f32
    mask_col = mask_ref[0]  # (Lx, 1) f32, ra2 key mask (1=keep)

    # ra1: queries from x, keys/values from p (no user mask), plus residual.
    x_new = relation_attention(x, p, None, w1_ref, b1_ref) + x
    # ra2: queries from p, keys/values from x_new, user mask, plus residual.
    p_new = relation_attention(p, x_new, mask_col, w2_ref, b2_ref) + p

    xnew_ref[0] = x_new.astype(xnew_ref.dtype)
    pnew_ref[0] = p_new.astype(pnew_ref.dtype)


# ---------------------------------------------------------------------------
# Parameter folding (done once, outside the kernel).
# ---------------------------------------------------------------------------
def _fuse_relation_attention_params(params):
    """Fold key/value/score/gate linears into one lane-padded weight.

    The query linear and the query-half of the score linear are dropped: their
    contribution is constant along the softmax axis and cancels exactly.
    """
    (wq, bq, wk, bk, wv, bv, wscore, bscore, wgate, bgate) = params
    del wq, bq
    H = wk.shape[0]
    WPAD = -(-(H + 3) // 128) * 128          # pad fused width to 128 lanes
    ws_k = wscore[H:2 * H, 0]                # score weight, key half
    wg_o = wgate[0:H, 0]                     # gate weight, "out" half
    wg_p = wgate[H:2 * H, 0]                 # gate weight, "p" half

    w = jnp.zeros((H, WPAD), jnp.float32)
    w = w.at[:, 0:H].set(wv)                 # value
    w = w.at[:, H].set(wv @ wg_o)            # value pre-contracted with gate
    w = w.at[:, H + 1].set(wk @ ws_k)        # key-side score column
    w = w.at[:, H + 2].set(wg_o + wg_p)      # gate column applied to P
    b = jnp.zeros((1, WPAD), jnp.float32)
    b = b.at[0, 0:H].set(bv[0])
    b = b.at[0, H].set(bv[0] @ wg_o)
    b = b.at[0, H + 1].set(bk[0] @ ws_k + bscore[0, 0])
    b = b.at[0, H + 2].set(bgate[0, 0])
    # bf16 weights: single-pass MXU on v6e/v7x and half the weight DMA bytes.
    return w.astype(jnp.bfloat16), b


# ---------------------------------------------------------------------------
# GATLayer wrapper: per-batch parallel grid, weights pinned in VMEM.
# ---------------------------------------------------------------------------
def gat_layer(x, p, mask, params_ra1, params_ra2):
    """GATLayer.forward: x = ra1(x, p) + x ; p = ra2(p, x, mask) + p."""
    B, Lx, H = x.shape
    _, Lp, _ = p.shape
    if mask is None:
        mask = jnp.ones((B, Lx), jnp.float32)
    mask_col = mask.astype(jnp.float32).reshape(B, Lx, 1)   # column per batch

    w1, b1 = _fuse_relation_attention_params(params_ra1)
    w2, b2 = _fuse_relation_attention_params(params_ra2)

    def per_batch(shape):
        nrest = len(shape) - 1
        return pl.BlockSpec((1,) + tuple(shape[1:]),
                            lambda b, _n=nrest: (b,) + (0,) * _n)

    def pinned(shape):
        nd = len(shape)
        return pl.BlockSpec(tuple(shape), lambda b, _n=nd: (0,) * _n)

    xn, pn = pl.pallas_call(
        _gat_layer_kernel,
        out_shape=(jax.ShapeDtypeStruct((B, Lx, H), jnp.float32),
                   jax.ShapeDtypeStruct((B, Lp, H), jnp.float32)),
        grid_spec=pltpu.PrefetchScalarGridSpec(
            num_scalar_prefetch=0,
            grid=(B,),                                   # one step per batch
            in_specs=[per_batch(x.shape),
                      per_batch(p.shape),
                      per_batch(mask_col.shape),
                      pinned(w1.shape), pinned(b1.shape),
                      pinned(w2.shape), pinned(b2.shape)],
            out_specs=[per_batch((B, Lx, H)), per_batch((B, Lp, H))],
        ),
        compiler_params=pltpu.CompilerParams(
            dimension_semantics=("parallel",),           # megacore on v7x
            vmem_limit_bytes=32 * 1024 * 1024),
    )(x, p, mask_col, w1, b1, w2, b2)
    return xn, pn


# ---------------------------------------------------------------------------
# Parameter init (deterministic, synthetic) + pure-JAX f32 reference.
# ---------------------------------------------------------------------------
def init_relation_attention_params(key, H):
    keys = jax.random.split(key, 10)
    s = 0.1
    wq = s * jax.random.normal(keys[0], (H, H), jnp.float32)
    bq = s * jax.random.normal(keys[1], (1, H), jnp.float32)
    wk = s * jax.random.normal(keys[2], (H, H), jnp.float32)
    bk = s * jax.random.normal(keys[3], (1, H), jnp.float32)
    wv = s * jax.random.normal(keys[4], (H, H), jnp.float32)
    bv = s * jax.random.normal(keys[5], (1, H), jnp.float32)
    wscore = s * jax.random.normal(keys[6], (2 * H, 1), jnp.float32)
    bscore = s * jax.random.normal(keys[7], (1, 1), jnp.float32)
    wgate = s * jax.random.normal(keys[8], (2 * H, 1), jnp.float32)
    bgate = s * jax.random.normal(keys[9], (1, 1), jnp.float32)
    return (wq, bq, wk, bk, wv, bv, wscore, bscore, wgate, bgate)


def _relation_attention_ref(p, x, mask, params):
    (wq, bq, wk, bk, wv, bv, wscore, bscore, wgate, bgate) = params
    H = p.shape[-1]
    q = p @ wq + bq
    k = x @ wk + bk
    v = x @ wv + bv
    score = (q @ wscore[:H]) + jnp.swapaxes(k @ wscore[H:], 1, 2) + bscore[0, 0]
    score = jnp.where(mask[:, None, :] == 0.0, -1000000000.0, score)
    attn = jax.nn.softmax(score, axis=-1)
    out = jnp.einsum("bcl,bld->bcd", attn, v) + p
    g = jax.nn.sigmoid(out @ wgate[:H] + p @ wgate[H:] + bgate[0, 0])
    return g * out + (1.0 - g) * p


def _gat_layer_ref(x, p, mask, params_ra1, params_ra2):
    B, _, _ = x.shape
    _, Np, _ = p.shape
    ones_mask = jnp.ones((B, Np), jnp.float32)
    x_new = _relation_attention_ref(x, p, ones_mask, params_ra1) + x
    p_new = _relation_attention_ref(p, x_new, mask, params_ra2) + p
    return x_new, p_new


if __name__ == "__main__":
    B, Nx, Np, H = 2, 8, 8, 32

    key = jax.random.PRNGKey(0)
    kx, kp, k1, k2 = jax.random.split(key, 4)

    x = jax.random.normal(kx, (B, Nx, H), jnp.float32)
    p = jax.random.normal(kp, (B, Np, H), jnp.float32)
    # mask over x's sequence for ra2 (1 = keep, 0 = masked out)
    mask = jnp.ones((B, Nx), jnp.float32).at[:, -2:].set(0.0)

    params_ra1 = init_relation_attention_params(k1, H)
    params_ra2 = init_relation_attention_params(k2, H)

    x_out, p_out = gat_layer(x, p, mask, params_ra1, params_ra2)
    x_out = jax.block_until_ready(x_out)
    p_out = jax.block_until_ready(p_out)

    # Correctness check against a pure-f32 reference.  Tolerance loosened (vs
    # 1e-4) because the projection matmuls intentionally run with bf16 MXU
    # operands (f32 accumulation) and the softmax uses the EUP approx recip.
    x_ref, p_ref = _gat_layer_ref(x, p, mask, params_ra1, params_ra2)
    assert jnp.allclose(x_out, x_ref, atol=2e-2, rtol=2e-2)
    assert jnp.allclose(p_out, p_ref, atol=2e-2, rtol=2e-2)

    print("KERNEL_OK")
</pallas_src>

<mosaic_0001>
module attributes {stable_mosaic.version = 11 : i64} {
  func.func @_gat_layer_kernel(%arg0: i32, %arg1: memref<1x8x32xf32, #tpu.memory_space<vmem>>, %arg2: memref<1x8x32xf32, #tpu.memory_space<vmem>>, %arg3: memref<1x8x1xf32, #tpu.memory_space<vmem>>, %arg4: memref<32x128xbf16, #tpu.memory_space<vmem>>, %arg5: memref<1x128xf32, #tpu.memory_space<vmem>>, %arg6: memref<32x128xbf16, #tpu.memory_space<vmem>>, %arg7: memref<1x128xf32, #tpu.memory_space<vmem>>, %arg8: memref<1x8x32xf32, #tpu.memory_space<vmem>>, %arg9: memref<1x8x32xf32, #tpu.memory_space<vmem>>) attributes {dimension_semantics = [#tpu.dimension_semantics<parallel>], iteration_bounds = array<i64: 2>, scalar_prefetch = 0 : i64, scratch_operands = 0 : i64, tpu.core_type = #tpu.core_type<tc>, window_params = [{transform_indices = @transform_0, window_bounds = array<i64: 1, 8, 32>}, {transform_indices = @transform_1, window_bounds = array<i64: 1, 8, 32>}, {transform_indices = @transform_2, window_bounds = array<i64: 1, 8, 1>}, {pipeline_mode = #tpu.pipeline_mode<synchronous>, transform_indices = @transform_3, window_bounds = array<i64: 32, 128>}, {pipeline_mode = #tpu.pipeline_mode<synchronous>, transform_indices = @transform_4, window_bounds = array<i64: 1, 128>}, {pipeline_mode = #tpu.pipeline_mode<synchronous>, transform_indices = @transform_5, window_bounds = array<i64: 32, 128>}, {pipeline_mode = #tpu.pipeline_mode<synchronous>, transform_indices = @transform_6, window_bounds = array<i64: 1, 128>}, {transform_indices = @transform_7, window_bounds = array<i64: 1, 8, 32>}, {transform_indices = @transform_8, window_bounds = array<i64: 1, 8, 32>}]} {
    %c0 = arith.constant 0 : index
    %c0_0 = arith.constant 0 : index
    %c0_1 = arith.constant 0 : index
    %0 = vector.load %arg1[%c0, %c0_0, %c0_1] : memref<1x8x32xf32, #tpu.memory_space<vmem>>, vector<1x8x32xf32>
    %1 = vector.shape_cast %0 : vector<1x8x32xf32> to vector<8x32xf32>
    %c0_2 = arith.constant 0 : index
    %c0_3 = arith.constant 0 : index
    %c0_4 = arith.constant 0 : index
    %2 = vector.load %arg2[%c0_2, %c0_3, %c0_4] : memref<1x8x32xf32, #tpu.memory_space<vmem>>, vector<1x8x32xf32>
    %3 = vector.shape_cast %2 : vector<1x8x32xf32> to vector<8x32xf32>
    %c0_5 = arith.constant 0 : index
    %c0_6 = arith.constant 0 : index
    %c0_7 = arith.constant 0 : index
    %4 = vector.load %arg3[%c0_5, %c0_6, %c0_7] : memref<1x8x1xf32, #tpu.memory_space<vmem>>, vector<1x8x1xf32>
    %5 = vector.shape_cast %4 : vector<1x8x1xf32> to vector<8x1xf32>
    %c0_8 = arith.constant 0 : index
    %c0_9 = arith.constant 0 : index
    %6 = vector.load %arg4[%c0_8, %c0_9] : memref<32x128xbf16, #tpu.memory_space<vmem>>, vector<32x128xbf16>
    %c0_10 = arith.constant 0 : index
    %c0_11 = arith.constant 0 : index
    %7 = vector.load %arg5[%c0_10, %c0_11] : memref<1x128xf32, #tpu.memory_space<vmem>>, vector<1x128xf32>
    %8 = tpu.concatenate %3, %1 in 0 : vector<8x32xf32>, vector<8x32xf32> -> vector<16x32xf32>
    %9 = arith.truncf %8 : vector<16x32xf32> to vector<16x32xbf16>
    %cst = arith.constant dense<0.000000e+00> : vector<16x128xf32>
    %10 = tpu.matmul %9, %6, %cst {dimension_numbers = #tpu.dot_dimension_numbers<[1], [0], [0], [1], [0, 0, 1, 1], [], []>} : vector<16x32xbf16>, vector<32x128xbf16>, vector<16x128xf32> -> vector<16x128xf32>
    %11 = vector.broadcast %7 : vector<1x128xf32> to vector<16x128xf32>
    %12 = arith.addf %10, %11 : vector<16x128xf32>
    %13 = vector.extract_strided_slice %12 {offsets = [0, 0], sizes = [8, 128], strides = [1, 1]} : vector<16x128xf32> to vector<8x128xf32>
    %14 = vector.extract_strided_slice %12 {offsets = [8, 0], sizes = [8, 128], strides = [1, 1]} : vector<16x128xf32> to vector<8x128xf32>
    %15 = vector.extract_strided_slice %13 {offsets = [0, 33], sizes = [8, 1], strides = [1, 1]} : vector<8x128xf32> to vector<8x1xf32>
    %cst_12 = arith.constant dense<0xFF800000> : vector<1xf32>
    %16 = vector.multi_reduction <maximumf>, %15, %cst_12 [0] : vector<8x1xf32> to vector<1xf32>
    %17 = vector.shape_cast %16 : vector<1xf32> to vector<1x1xf32>
    %18 = vector.broadcast %17 : vector<1x1xf32> to vector<8x1xf32>
    %19 = arith.subf %15, %18 : vector<8x1xf32>
    %20 = math.exp %19 : vector<8x1xf32>
    %cst_13 = arith.constant dense<0.000000e+00> : vector<1xf32>
    %21 = vector.multi_reduction <add>, %20, %cst_13 [0] : vector<8x1xf32> to vector<1xf32>
    %22 = vector.shape_cast %21 : vector<1xf32> to vector<1x1xf32>
    %23 = tpu.reciprocal %22 {approx = true} : vector<1x1xf32> -> vector<1x1xf32>
    %24 = vector.broadcast %23 : vector<1x1xf32> to vector<8x1xf32>
    %25 = arith.mulf %20, %24 : vector<8x1xf32>
    %26 = vector.broadcast %25 : vector<8x1xf32> to vector<8x128xf32>
    %27 = arith.mulf %26, %13 : vector<8x128xf32>
    %cst_14 = arith.constant dense<0.000000e+00> : vector<128xf32>
    %28 = vector.multi_reduction <add>, %27, %cst_14 [0] : vector<8x128xf32> to vector<128xf32>
    %29 = vector.shape_cast %28 : vector<128xf32> to vector<1x128xf32>
    %30 = vector.extract_strided_slice %29 {offsets = [0, 0], sizes = [1, 32], strides = [1, 1]} : vector<1x128xf32> to vector<1x32xf32>
    %31 = vector.broadcast %30 : vector<1x32xf32> to vector<8x32xf32>
    %32 = arith.addf %31, %1 : vector<8x32xf32>
    %33 = vector.extract_strided_slice %29 {offsets = [0, 32], sizes = [1, 1], strides = [1, 1]} : vector<1x128xf32> to vector<1x1xf32>
    %34 = vector.extract_strided_slice %14 {offsets = [0, 34], sizes = [8, 1], strides = [1, 1]} : vector<8x128xf32> to vector<8x1xf32>
    %35 = vector.broadcast %33 : vector<1x1xf32> to vector<8x1xf32>
    %36 = arith.addf %35, %34 : vector<8x1xf32>
    %37 = arith.negf %36 : vector<8x1xf32>
    %38 = math.exp %37 : vector<8x1xf32>
    %cst_15 = arith.constant 1.000000e+00 : f32
    %39 = vector.broadcast %cst_15 : f32 to vector<8x1xf32>
    %40 = arith.addf %39, %38 : vector<8x1xf32>
    %41 = arith.divf %39, %40 : vector<8x1xf32>
    %42 = vector.broadcast %41 : vector<8x1xf32> to vector<8x32xf32>
    %43 = arith.mulf %42, %32 : vector<8x32xf32>
    %cst_16 = arith.constant 1.000000e+00 : f32
    %44 = vector.broadcast %cst_16 : f32 to vector<8x1xf32>
    %45 = arith.subf %44, %41 : vector<8x1xf32>
    %46 = vector.broadcast %45 : vector<8x1xf32> to vector<8x32xf32>
    %47 = arith.mulf %46, %1 : vector<8x32xf32>
    %48 = arith.addf %43, %47 : vector<8x32xf32>
    %49 = arith.addf %48, %1 : vector<8x32xf32>
    %c0_17 = arith.constant 0 : index
    %c0_18 = arith.constant 0 : index
    %50 = vector.load %arg6[%c0_17, %c0_18] : memref<32x128xbf16, #tpu.memory_space<vmem>>, vector<32x128xbf16>
    %c0_19 = arith.constant 0 : index
    %c0_20 = arith.constant 0 : index
    %51 = vector.load %arg7[%c0_19, %c0_20] : memref<1x128xf32, #tpu.memory_space<vmem>>, vector<1x128xf32>
    %52 = tpu.concatenate %49, %3 in 0 : vector<8x32xf32>, vector<8x32xf32> -> vector<16x32xf32>
    %53 = arith.truncf %52 : vector<16x32xf32> to vector<16x32xbf16>
    %cst_21 = arith.constant dense<0.000000e+00> : vector<16x128xf32>
    %54 = tpu.matmul %53, %50, %cst_21 {dimension_numbers = #tpu.dot_dimension_numbers<[1], [0], [0], [1], [0, 0, 1, 1], [], []>} : vector<16x32xbf16>, vector<32x128xbf16>, vector<16x128xf32> -> vector<16x128xf32>
    %55 = vector.broadcast %51 : vector<1x128xf32> to vector<16x128xf32>
    %56 = arith.addf %54, %55 : vector<16x128xf32>
    %57 = vector.extract_strided_slice %56 {offsets = [0, 0], sizes = [8, 128], strides = [1, 1]} : vector<16x128xf32> to vector<8x128xf32>
    %58 = vector.extract_strided_slice %56 {offsets = [8, 0], sizes = [8, 128], strides = [1, 1]} : vector<16x128xf32> to vector<8x128xf32>
    %59 = vector.extract_strided_slice %57 {offsets = [0, 33], sizes = [8, 1], strides = [1, 1]} : vector<8x128xf32> to vector<8x1xf32>
    %cst_22 = arith.constant 0.000000e+00 : f32
    %60 = vector.broadcast %cst_22 : f32 to vector<8x1xf32>
    %61 = arith.cmpf ogt, %5, %60 : vector<8x1xf32>
    %cst_23 = arith.constant -1.000000e+09 : f32
    %62 = vector.broadcast %cst_23 : f32 to vector<8x1xf32>
    %63 = arith.select %61, %59, %62 : vector<8x1xi1>, vector<8x1xf32>
    %cst_24 = arith.constant dense<0xFF800000> : vector<1xf32>
    %64 = vector.multi_reduction <maximumf>, %63, %cst_24 [0] : vector<8x1xf32> to vector<1xf32>
    %65 = vector.shape_cast %64 : vector<1xf32> to vector<1x1xf32>
    %66 = vector.broadcast %65 : vector<1x1xf32> to vector<8x1xf32>
    %67 = arith.subf %63, %66 : vector<8x1xf32>
    %68 = math.exp %67 : vector<8x1xf32>
    %cst_25 = arith.constant dense<0.000000e+00> : vector<1xf32>
    %69 = vector.multi_reduction <add>, %68, %cst_25 [0] : vector<8x1xf32> to vector<1xf32>
    %70 = vector.shape_cast %69 : vector<1xf32> to vector<1x1xf32>
    %71 = tpu.reciprocal %70 {approx = true} : vector<1x1xf32> -> vector<1x1xf32>
    %72 = vector.broadcast %71 : vector<1x1xf32> to vector<8x1xf32>
    %73 = arith.mulf %68, %72 : vector<8x1xf32>
    %74 = vector.broadcast %73 : vector<8x1xf32> to vector<8x128xf32>
    %75 = arith.mulf %74, %57 : vector<8x128xf32>
    %cst_26 = arith.constant dense<0.000000e+00> : vector<128xf32>
    %76 = vector.multi_reduction <add>, %75, %cst_26 [0] : vector<8x128xf32> to vector<128xf32>
    %77 = vector.shape_cast %76 : vector<128xf32> to vector<1x128xf32>
    %78 = vector.extract_strided_slice %77 {offsets = [0, 0], sizes = [1, 32], strides = [1, 1]} : vector<1x128xf32> to vector<1x32xf32>
    %79 = vector.broadcast %78 : vector<1x32xf32> to vector<8x32xf32>
    %80 = arith.addf %79, %3 : vector<8x32xf32>
    %81 = vector.extract_strided_slice %77 {offsets = [0, 32], sizes = [1, 1], strides = [1, 1]} : vector<1x128xf32> to vector<1x1xf32>
    %82 = vector.extract_strided_slice %58 {offsets = [0, 34], sizes = [8, 1], strides = [1, 1]} : vector<8x128xf32> to vector<8x1xf32>
    %83 = vector.broadcast %81 : vector<1x1xf32> to vector<8x1xf32>
    %84 = arith.addf %83, %82 : vector<8x1xf32>
    %85 = arith.negf %84 : vector<8x1xf32>
    %86 = math.exp %85 : vector<8x1xf32>
    %cst_27 = arith.constant 1.000000e+00 : f32
    %87 = vector.broadcast %cst_27 : f32 to vector<8x1xf32>
    %88 = arith.addf %87, %86 : vector<8x1xf32>
    %89 = arith.divf %87, %88 : vector<8x1xf32>
    %90 = vector.broadcast %89 : vector<8x1xf32> to vector<8x32xf32>
    %91 = arith.mulf %90, %80 : vector<8x32xf32>
    %cst_28 = arith.constant 1.000000e+00 : f32
    %92 = vector.broadcast %cst_28 : f32 to vector<8x1xf32>
    %93 = arith.subf %92, %89 : vector<8x1xf32>
    %94 = vector.broadcast %93 : vector<8x1xf32> to vector<8x32xf32>
    %95 = arith.mulf %94, %3 : vector<8x32xf32>
    %96 = arith.addf %91, %95 : vector<8x32xf32>
    %97 = arith.addf %96, %3 : vector<8x32xf32>
    %c0_29 = arith.constant 0 : index
    %c0_30 = arith.constant 0 : index
    %c0_31 = arith.constant 0 : index
    %98 = vector.load %arg8[%c0_29, %c0_30, %c0_31] : memref<1x8x32xf32, #tpu.memory_space<vmem>>, vector<1x8x32xf32>
    %99 = vector.shape_cast %98 : vector<1x8x32xf32> to vector<8x32xf32>
    %100 = vector.shape_cast %49 : vector<8x32xf32> to vector<1x8x32xf32>
    tpu.vector_store %arg8[%c0_29, %c0_30, %c0_31], %100 {strides = array<i32>} : memref<1x8x32xf32, #tpu.memory_space<vmem>>, vector<1x8x32xf32>,
    %c0_32 = arith.constant 0 : index
    %c0_33 = arith.constant 0 : index
    %c0_34 = arith.constant 0 : index
    %101 = vector.load %arg9[%c0_32, %c0_33, %c0_34] : memref<1x8x32xf32, #tpu.memory_space<vmem>>, vector<1x8x32xf32>
    %102 = vector.shape_cast %101 : vector<1x8x32xf32> to vector<8x32xf32>
    %103 = vector.shape_cast %97 : vector<8x32xf32> to vector<1x8x32xf32>
    tpu.vector_store %arg9[%c0_32, %c0_33, %c0_34], %103 {strides = array<i32>} : memref<1x8x32xf32, #tpu.memory_space<vmem>>, vector<1x8x32xf32>,
    return
  }
  func.func @transform_0(%arg0: i32) -> (i32, i32, i32) {
    %c0_i32 = arith.constant 0 : i32
    %c0_i32_0 = arith.constant 0 : i32
    %c0_i32_1 = arith.constant 0 : i32
    return %arg0, %c0_i32, %c0_i32_0 : i32, i32, i32
  }
  func.func @transform_1(%arg0: i32) -> (i32, i32, i32) {
    %c0_i32 = arith.constant 0 : i32
    %c0_i32_0 = arith.constant 0 : i32
    %c0_i32_1 = arith.constant 0 : i32
    return %arg0, %c0_i32, %c0_i32_0 : i32, i32, i32
  }
  func.func @transform_2(%arg0: i32) -> (i32, i32, i32) {
    %c0_i32 = arith.constant 0 : i32
    %c0_i32_0 = arith.constant 0 : i32
    %c0_i32_1 = arith.constant 0 : i32
    return %arg0, %c0_i32, %c0_i32_0 : i32, i32, i32
  }
  func.func @transform_3(%arg0: i32) -> (i32, i32) {
    %c0_i32 = arith.constant 0 : i32
    %c0_i32_0 = arith.constant 0 : i32
    %c0_i32_1 = arith.constant 0 : i32
    return %c0_i32, %c0_i32_0 : i32, i32
  }
  func.func @transform_4(%arg0: i32) -> (i32, i32) {
    %c0_i32 = arith.constant 0 : i32
    %c0_i32_0 = arith.constant 0 : i32
    %c0_i32_1 = arith.constant 0 : i32
    return %c0_i32, %c0_i32_0 : i32, i32
  }
  func.func @transform_5(%arg0: i32) -> (i32, i32) {
    %c0_i32 = arith.constant 0 : i32
    %c0_i32_0 = arith.constant 0 : i32
    %c0_i32_1 = arith.constant 0 : i32
    return %c0_i32, %c0_i32_0 : i32, i32
  }
  func.func @transform_6(%arg0: i32) -> (i32, i32) {
    %c0_i32 = arith.constant 0 : i32
    %c0_i32_0 = arith.constant 0 : i32
    %c0_i32_1 = arith.constant 0 : i32
    return %c0_i32, %c0_i32_0 : i32, i32
  }
  func.func @transform_7(%arg0: i32) -> (i32, i32, i32) {
    %c0_i32 = arith.constant 0 : i32
    %c0_i32_0 = arith.constant 0 : i32
    %c0_i32_1 = arith.constant 0 : i32
    return %arg0, %c0_i32, %c0_i32_0 : i32, i32, i32
  }
  func.func @transform_8(%arg0: i32) -> (i32, i32, i32) {
    %c0_i32 = arith.constant 0 : i32
    %c0_i32_0 = arith.constant 0 : i32
    %c0_i32_1 = arith.constant 0 : i32
    return %arg0, %c0_i32, %c0_i32_0 : i32, i32, i32
  }
}

</mosaic_0001>

<bundles_post_ra>
// kernel: tpu_custom_call.1
= control target key start
LH: loop header
LB: loop body
LE: loop exit
PB: predicated region body
PF: predicated region fallthrough
CT: control target
= control target key end

     0   :  { %14 = vsyncpa [#allocation3], 0  ;;  %s1472_s0 = inlined_call_operand.vmem [shape: f32[2,8,32], index: 0, kind: input, shape index: {}]   ;;  %s1473_s1 = inlined_call_operand.hbm [shape: f32[2,8,32], index: 1, kind: input, shape index: {}]   ;;  %s1474_s2 = inlined_call_operand.vmem [shape: f32[2,8,1], index: 2, kind: input, shape index: {}]   ;;  %s1475_s3 = inlined_call_operand.hbm [shape: bf16[32,128], index: 3, kind: input, shape index: {}]   ;;  %s1476_s4 = inlined_call_operand.vmem [shape: f32[1,128], index: 4, kind: input, shape index: {}]   ;;  %s1477_s5 = inlined_call_operand.vmem [shape: bf16[32,128], index: 5, kind: input, shape index: {}]   ;;  %s1478_s6 = inlined_call_operand.vmem [shape: f32[1,128], index: 6, kind: input, shape index: {}]   ;;  %s1479_s7 = inlined_call_operand.hbm [shape: f32[2,8,32], index: 7, kind: output, shape index: {0}]   ;;  %s1480_s8 = inlined_call_operand.hbm [shape: f32[2,8,32], index: 8, kind: output, shape index: {1}]  }
   0x1   :  { %16 = vsyncpa [#allocation3 + $0x1], 0 }
   0x2   :  { %17 = vsyncpa [#allocation6], 0 }
   0x3   :  { %18 = vsyncpa [#allocation4], 0 }
   0x4   :  { %20 = vsyncpa [#allocation4 + $0x1], 0 }
   0x5   :  { %21 = vsyncpa [#allocation9], 0 }
   0x6   :  { %23 = vsyncpa [#allocation9 + $0x1], 0  ;;  %s1183_s27 = smov 0   ;;  %s1185_s28 = smov 0  }
   0x7   :  { %s1187_s29 = smov 0   ;;  %s1189_s30 = smov 0  }
   0x8 LB: > { %s1204_s9 = sadd.s32 4294967295, %s1123_s30   ;;  %s816_s10 = sadd.s32 4294967294, %s1123_s30   ;;  %s1123_s30 = sphi %s1189_s30, %s1500_s30   ;;  %s1119_s29 = sphi %s1187_s29, %s1503_s29   ;;  %s1115_s28 = sphi %s1185_s28, %s1502_s28   ;;  %s1111_s27 = sphi %s1183_s27, %s1501_s27  }
   0x9   : > { %p75_p0 = scmp.ne.s32.totalorder %s1115_s28, %s1111_s27  ;;  %p1481_p1 = scmp.eq.s32.totalorder %s1204_s9, 0 }
   0xa   : > { %p215_p3 = scmp.eq.s32.totalorder %s816_s10, 1  ;;  %p817_p5 = scmp.ge.s32.totalorder %s1123_s30, 1 }
   0xb   : > { %p1213_p4 = por %p1481_p1, %p75_p0  ;;  %p248_p7 = scmp.lt.s32.totalorder %s1123_s30, 3 }
   0xc   : > { %p1218_p6 = por %p215_p3, %p75_p0  ;;  %s1125_s14 = smov [#allocation5]  }
   0xd   : > { %s1486_s11 = scalar_select %p1213_p4, 1, 0 }
   0xe   : > { %s1487_s12 = scalar_select %p1218_p6, 1, 0 }
   0xf   : > { %p1223_p8 = pnand %p817_p5, %p248_p7  ;;  %s260_s15 = sshll.u32 %s1125_s14, 4  ;;  %s1227_s15 = int_to_ptr.vmem [resolvable:$true] %s260_s15 }
  0x10   : > { %s1239_s17 = sadd.s32 1, %s1123_s30   ;;  %s62_s18 = sadd.s32 1, %s1119_s29 }
  0x11   : > { %s1488_s13 = scalar_select %p1223_p8, 1, 0 }
  0x12   : > { %p877_p9 = pneg %p1223_p8  ;;  %1490 = sst [smem:[#allocation14_spill]] %s1239_s17 }
  0x13   : > { %s59_s19 = ssub.s32 %s1123_s30, %s1239_s17  ;;  %s963_s22 = scalar_lea.hbm %s1475_s3, 256 }
  0x14   : > { %p1234_p11 = pnand %p877_p9, %p1481_p1  ;;  %p964_p12 = scmp.ne.s32.totalorder %s1475_s3, %s963_s22 }
  0x15   : > { %p970_p5 = scmp.lt.u32.totalorder %s963_s22, %s1475_s3 }
  0x16   : > { %p965_p13 = pneg %p1234_p11 }
  0x18   : > { %p966_p0 = pnand %p965_p13, %p964_p12 }
  0x1a   : > { %p967_p3 = pneg %p966_p0 }
  0x1c   : > { %p972_p7 = pnand %p970_p5, %p967_p3 }
  0x1e   : > { %975 = shalt.err (!%p972_p7)
}
  0x1f   : > { %s976_s10 = scalar_lea.vmem %s1227_s15, 256  ;;  %p984_p2 = scmp.lt.s32.totalorder %s1227_s15, %s1227_s15 }
  0x20   : > { %p977_p9 = scmp.ne.s32.totalorder %s1227_s15, %s976_s10  ;;  %p985_p6 = scmp.lt.s32.totalorder %s976_s10, %s976_s10 }
  0x22   : > { %p979_p10 = pnand %p977_p9, %p965_p13  ;;  %p986_p4 = por %p985_p6, %p984_p2 }
  0x24   : > { %p980_p1 = pneg %p979_p10 }
  0x26   : > { %p987_p8 = pnand %p986_p4, %p980_p1 }
  0x28   : > { %990 = shalt.err (!%p987_p8)
}
  0x29   : > { %s1126_s14 = smov 64   ;;  %s1127_s20 = smov 4  }
  0x2a   : > { %880 = dma.hbm_to_vmem [thread:$0]  (!%p1234_p11), %s1475_s3, 256, %s1227_s15, [#allocation6], %s1126_s14, %s1126_s14, %s1127_s20  }
  0x2b   : > { %p60_p2 = scmp.eq.s32.totalorder %s59_s19, 0  ;;  %p69_p1 = scmp.ne.s32.totalorder %s1119_s29, %s1115_s28 }
  0x2c   : > { %p70_p4 = scmp.eq.s32.totalorder %s1123_s30, 0  ;;  %p893_p6 = scmp.lt.s32.totalorder %s1123_s30, 2 }
  0x2d   : > { %s1270_s23 = scalar_select %p60_p2, %s1119_s29, %s62_s18  }
  0x2e   : > { %p71_p8 = por %p70_p4, %p69_p1  ;;  %p1491_p10 = scmp.eq.s32.totalorder %s1204_s9, 1 }
  0x2f   : > { %s290_s25 = sand.u32 1, %s1119_s29   ;;  %s821_s26 = sshll.u32 %s1123_s30, 7 }
  0x30   : > { %p1274_p12 = por %p1491_p10, %p69_p1  ;;  %s820_s10 = sshll.u32 %s290_s25, 3 }
  0x31   : > { %s1283_s21 = scalar_lea.hbm %s1473_s1, %s821_s26  ;;  %s294_s15 = scalar_lea.vmem [#allocation2], %s820_s10 }
  0x32   : > { %s301_s18 = sshll.u32 %s294_s15, 4  ;;  %p1285_p11 = pnand %p893_p6, %p71_p8  ;;  %s1289_s18 = int_to_ptr.vmem [resolvable:$true] %s301_s18 }
  0x33   : > { %s291_s14 = scalar_lea.sflag [#allocation3], %s290_s25  ;;  %s991_s20 = scalar_lea.hbm %s1283_s21, 128 }
  0x34   : > { %p992_p13 = scmp.ne.s32.totalorder %s1283_s21, %s991_s20  ;;  %p993_p0 = pneg %p1285_p11 }
  0x35   : > { %s996_s26 = scalar_lea.hbm %s1473_s1, 256  ;;  %p997_p7 = scmp.lt.u32.totalorder %s1283_s21, %s1473_s1 }
  0x36   : > { %p994_p3 = pnand %p993_p0, %p992_p13  ;;  %p998_p9 = scmp.lt.u32.totalorder %s996_s26, %s991_s20 }
  0x37   : > { %p1000_p1 = scmp.lt.u32.totalorder %s991_s20, %s1283_s21 }
  0x38   : > { %p995_p5 = pneg %p994_p3  ;;  %p999_p2 = por %p998_p9, %p997_p7 }
  0x3a   : > { %p1001_p4 = por %p1000_p1, %p999_p2 }
  0x3c   : > { %p1002_p6 = pnand %p1001_p4, %p995_p5 }
  0x3e   : > { %1005 = shalt.err (!%p1002_p6)
}
  0x3f   : > { %s1006_s25 = scalar_lea.vmem %s1289_s18, 128  ;;  %s1128_s15 = smov [#allocation2]  }
  0x40   : > { %p1007_p8 = scmp.ne.s32.totalorder %s1289_s18, %s1006_s25  ;;  %s1011_s17 = sshll.u32 %s1128_s15, 4  ;;  %s1012_s17 = int_to_ptr.vmem [resolvable:$false] %s1011_s17 }
  0x41   : > { %s1013_s22 = scalar_lea.vmem %s1012_s17, 256  ;;  %p1014_p3 = scmp.lt.s32.totalorder %s1289_s18, %s1012_s17 }
  0x42   : > { %p1009_p10 = pnand %p1007_p8, %p993_p0  ;;  %p1015_p7 = scmp.lt.s32.totalorder %s1013_s22, %s1006_s25 }
  0x44   : > { %p1010_p13 = pneg %p1009_p10  ;;  %p1016_p9 = por %p1015_p7, %p1014_p3 }
  0x46   : > { %p1017_p2 = pnand %p1016_p9, %p1010_p13 }
  0x48   : > { %1020 = shalt.err (!%p1017_p2)
}
  0x49   : > { %884 = dma.hbm_to_vmem [thread:$0]  (!%p1285_p11), %s1283_s21, 128, %s1289_s18, %s291_s14  }
  0x4a   : > { %p1494_p5 = scmp.ne.s32.totalorder %s1488_s13, 0 }
  0x4b   : > { %s1319_s20 = sand.u32 (!%p1494_p5), 1, %s1115_s28   ;;  %p1495_p0 = scmp.ne.s32.totalorder (!%p1494_p5), %s1486_s11, 0 }
  0x4c   : > { %317 = sbr.rel (%p1494_p5) target bundleno = 1379 (0x563), region = 48  ;;  %s1322_s26 = sshll.u32 (!%p1494_p5), %s1319_s20, 3 }
  0x4d   : > { %s320_s10 = scalar_lea.sflag (!%p1494_p5), [#allocation3], %s1319_s20  ;;  %s323_s16 = scalar_lea.vmem (!%p1494_p5), [#allocation2], %s1322_s26 }
  0x53   : > { %1094 = dma.done.wait (%p1495_p0), %s320_s10, 128  }
  0x54   : > { %1096 = vsyncadd (%p1495_p0), %s320_s10, 4294967168  ;;  %p1496_p11 = scmp.eq.s32.totalorder %s1204_s9, 0 }
  0x56   : > { %1098 = dma.done.wait (%p1496_p11), [#allocation6], 256   ;;  %p1497_p1 = pmov %p1496_p11 }
  0x57   : > { %p373_p4 = scmp.lt.s32.totalorder %s1204_s9, 1  ;;  %v1129_v0 = vmov 0.0   ;;  %vm1130_vm0 = vmmov 0   ;;  %v943_v1 = vld [vmem:[#allocation5] sm:$0xff]   ;;  %v944_v2 = vld [vmem:[#allocation5 + $0x8] sm:$0xff]   ;;  %v1350_v4 = vld [vmem:[%s323_s16] sm:$0xff] }
  0x58   : > { %1100 = vsyncadd (%p1497_p1), [#allocation6], 4294967040  ;;  %851 = vmatprep.subr.bf16.mxu0 %v1129_v0  ;;  %855 = vmatprep.mubr.msk.bf16.mxu0 %vm1130_vm0, %v1129_v0  ;;  %vm409_vm1 = vcmask 261120   ;;  %v1131_v6 = vmov 33   ;;  %v829_v7 = vld [vmem:[%s1476_s4] ss:$0 sm:$0xff] }
  0x59   : > { %s1338_s13 = scalar_select %p373_p4, %s1204_s9, 1  ;;  %859 = vmatprep.subr.bf16.mxu1 %v1129_v0  ;;  %863 = vmatprep.mubr.msk.bf16.mxu1 %vm1130_vm0, %v1129_v0  ;;  %vm454_vm2 = vcmask 277768   ;;  %v1133_v33 = vmov 32   ;;  %v945_v49 = vld [vmem:[%s1477_s5] sm:$0xff]   ;;  %v946_v50 = vld [vmem:[%s1477_s5 + $0x8] sm:$0xff]   ;;  %vm587_vm4 = vcmask 7168  }
  0x5a   : > { %852 = vmatpush3.bf16.msra.mxu0 %v943_v1  ;;  %938 = vset.pattern.permute.xlu0 %v1131_v6  ;;  %s1132_s15 = smov 126   ;;  %s365_s21 = scalar_lea.vmem [#allocation7], %s1322_s26  ;;  %v834_v59 = vld [vmem:[%s1478_s6] ss:$0 sm:$0xff] }
  0x5b   : > { %s827_s11 = sshll.u32 %s1338_s13, 3  ;;  %853 = vmatprep.subr.bf16.mxu0 %v1129_v0  ;;  %939 = vset.pattern.permute.xlu1 %v1133_v33  ;;  %s1134_s14 = smov 95  }
  0x5c   : > { %s376_s19 = scalar_lea.vmem %s1472_s0, %s827_s11  ;;  %860 = vmatpush3.bf16.msra.mxu1 %v945_v49  ;;  %s380_s22 = scalar_lea.vmem %s1474_s2, %s827_s11 }
  0x5d   : > { %v1348_v3 = vld [vmem:[%s376_s19] sm:$0xff]  ;;  %861 = vmatprep.subr.bf16.mxu1 %v1129_v0  ;;  %s841_s13 = sshll.u32 %s1204_s9, 7  ;;  %s667_s16 = sshll.u32 %s365_s21, 4  ;;  %s668_s16 = int_to_ptr.vmem [resolvable:$true] %s667_s16 }
  0x5e   : > { %v390_v5 = vpack.c.bf16 %v1348_v3, %v1350_v4  ;;  %854 = vmatpush3.bf16.msra.mxu0 %v944_v2  ;;  %v1135_v2 = vmov 0   ;;  %s1396_s10 = scalar_lea.hbm %s1479_s7, %s841_s13  ;;  %s649_s18 = scalar_lea.sflag [#allocation4], %s1319_s20 }
  0x5f   : > { %s1021_s19 = scalar_lea.vmem %s668_s16, 128 }
  0x60   : > { %862 = vmatpush3.bf16.msra.mxu1 %v946_v50  ;;  %p1022_p6 = scmp.ne.s32.totalorder %s668_s16, %s1021_s19 }
  0x61   : > { %856 = vmatmul.mubr.msk.bf16.vlgmr.msra.gmra.mrb[0].mxu0 %vm409_vm1, %v390_v5 }
  0x62   : > { %p1023_p8 = pnand %p1022_p6, %p1274_p12 }
  0x64   : > { %p1024_p10 = pneg %p1023_p8 }
 0x134   : > { %v447_v8 = vpop.f32.mrb[0].mxu0 }
 0x135   : > { %v448_v9 = vadd.f32 %v829_v7, %v447_v8  ;;  %v857_v10 = vpop.f32.mrb[1].mxu0 }
 0x136   : > { %v450_v11 = vpop.f32.mrb[2].mxu0 }
 0x137   : > { %v455_v12 = vsel %vm454_vm2, %v448_v9, -inf  ;;  %v858_v13 = vpop.f32.mrb[3].mxu0  ;;  %v451_v32 = vadd.f32 %v829_v7, %v450_v11 }
 0x138   : > { %v456_v14 = vrot.slane %v455_v12, 4 }
 0x13a   : > { %v457_v15 = vmax.f32 %v455_v12, %v456_v14 }
 0x13c   : > { %v458_v16 = vrot.slane %v457_v15, 2 }
 0x13e   : > { %v459_v17 = vmax.f32 %v457_v15, %v458_v16 }
 0x140   : > { %v460_v18 = vrot.slane %v459_v17, 1 }
 0x142   : > { %v461_v19 = vmax.f32 %v459_v17, %v460_v18 }
 0x144   : > { %v462_v20 = vsub.f32 %v448_v9, %v461_v19 }
 0x146   : > { %v463_v21 = vmul.f32 1.442695, %v462_v20 }
 0x148   : > { %947 = vpow2.f32 %v463_v21 }
 0x152   : > { %v948_v22 = vpop.eup %947 }
 0x153   : > { %v465_v23 = vsel %vm454_vm2, %v948_v22, 0.0 }
 0x154   : > { %v466_v24 = vrot.slane %v465_v23, 4 }
 0x156   : > { %v467_v25 = vadd.f32 %v466_v24, %v465_v23 }
 0x158   : > { %v468_v26 = vrot.slane %v467_v25, 2 }
 0x15a   : > { %v469_v27 = vadd.f32 %v468_v26, %v467_v25 }
 0x15c   : > { %v470_v28 = vrot.slane %v469_v27, 1 }
 0x15e   : > { %v471_v29 = vadd.f32 %v470_v28, %v469_v27 }
 0x160   : > { %949 = vrcp.f32 %v471_v29 }
 0x16a   : > { %v950_v30 = vpop.eup %949 }
 0x16b   : > { %v473_v31 = vmul.f32 %v950_v30, %v948_v22 }
 0x16d   : > { %476 = vperm.xlu0 %938, %v473_v31  }
 0x171   : > { %488 = vrot.lane.b32.xlu0 %v451_v32, %s1132_s15 }
 0x172   : > { %942 = vset.pattern.permute.xlu0 %v1133_v33 }
 0x1ec   : > { %v477_v34 = vpop.permute.xlu0 %476 }
 0x1ed   : > { %v479_v35 = vmul.f32 %v477_v34, %v448_v9 }
 0x1ef   : > { %v480_v36 = vrot.slane %v479_v35, 4 }
 0x1f0   : > { %v489_v42 = vpop.permute.xlu0 %488 }
 0x1f1   : > { %v481_v37 = vadd.f32 %v480_v36, %v479_v35 }
 0x1f3   : > { %v482_v38 = vrot.slane %v481_v37, 2 }
 0x1f5   : > { %v483_v39 = vadd.f32 %v482_v38, %v481_v37 }
 0x1f7   : > { %v484_v40 = vrot.slane %v483_v39, 1 }
 0x1f9   : > { %v485_v41 = vadd.f32 %v484_v40, %v483_v39 }
 0x1fb   : > { %v491_v43 = vadd.f32 %v489_v42, %v485_v41  ;;  %v486_v52 = vadd.f32 %v485_v41, %v1348_v3 }
 0x1fd   : > { %v833_v44 = vmul.f32 -1.442695, %v491_v43 }
 0x1ff   : > { %951 = vpow2.f32 %v833_v44 }
 0x209   : > { %v952_v45 = vpop.eup %951 }
 0x20a   : > { %v495_v46 = vadd.f32 1.0, %v952_v45 }
 0x20c   : > { %953 = vrcp.f32 %v495_v46 }
 0x216   : > { %v954_v47 = vpop.eup %953 }
 0x217   : > { %500 = vperm.xlu1 %939, %v954_v47   ;;  %v504_v48 = vsub.f32 1.0, %v954_v47 }
 0x21b   : > { %507 = vperm.xlu1 %939, %v504_v48  }
 0x21f   : > { %940 = vset.pattern.permute.xlu1 %v1135_v2 }
 0x296   : > { %v501_v51 = vpop.permute.xlu1 %500 }
 0x297   : > { %v503_v54 = vmul.f32 %v501_v51, %v486_v52 }
 0x29a   : > { %v508_v53 = vpop.permute.xlu1 %507 }
 0x29b   : > { %v510_v55 = vmul.f32 %v508_v53, %v1348_v3 }
 0x29d   : > { %v511_v56 = vadd.f32 %v510_v55, %v503_v54 }
 0x29f   : > { %v512_v57 = vadd.f32 %v511_v56, %v1348_v3  ;;  %v384_v3 = vld [vmem:[%s380_s22] sm:$0xff] }
 0x2a0   : > { %vm581_vm3 = vcmp.gt.f32.partialorder %v384_v3, 0.0 }
 0x2a1   : > { %v518_v58 = vpack.c.bf16 %v1350_v4, %v512_v57  ;;  %646 = vst.msk [vmem:[%s365_s21] sm:$0xff] %vm409_vm1, %v512_v57 }
 0x2a3   : > { %864 = vmatmul.mubr.msk.bf16.vlgmr.msra.gmra.mrb[0].mxu1 %vm409_vm1, %v518_v58 }
 0x376   : > { %v574_v60 = vpop.f32.mrb[0].mxu1 }
 0x377   : > { %v575_v61 = vadd.f32 %v834_v59, %v574_v60  ;;  %v865_v62 = vpop.f32.mrb[1].mxu1 }
 0x378   : > { %v577_v63 = vpop.f32.mrb[2].mxu1 }
 0x379   : > { %583 = vrot.lane.b32.xlu0 %v575_v61, %s1134_s14  ;;  %v866_v0 = vpop.f32.mrb[3].mxu1  ;;  %v578_v1 = vadd.f32 %v834_v59, %v577_v63  ;;  %s1136_s14 = smov [#allocation7]  }
 0x37a   : > { %s1025_s25 = sshll.u32 %s1136_s14, 4  ;;  %s1026_s25 = int_to_ptr.vmem [resolvable:$false] %s1025_s25 }
 0x37b   : > { %s1027_s17 = scalar_lea.vmem %s1026_s25, 256  ;;  %p1028_p13 = scmp.lt.s32.totalorder %s668_s16, %s1026_s25 }
 0x37c   : > { %p1029_p3 = scmp.lt.s32.totalorder %s1027_s17, %s1021_s19 }
 0x37d   : > { %621 = vrot.lane.b32.xlu0 %v578_v1, %s1132_s15 }
 0x37e   : > { %p1030_p7 = por %p1029_p3, %p1028_p13 }
 0x380   : > { %p1031_p9 = pnand %p1030_p7, %p1024_p10 }
 0x3eb   : > { %v584_v5 = vpop.permute.xlu0 %583 }
 0x3ec   : > { %v586_v6 = vsel %vm581_vm3, %v584_v5, -1e+09 }
 0x3ed   : > { %v588_v7 = vsel %vm587_vm4, %v586_v6, -inf }
 0x3ee   : > { %v589_v8 = vrot.slane %v588_v7, 4 }
 0x3ef   : > { %v622_v35 = vpop.permute.xlu0 %621 }
 0x3f0   : > { %v590_v9 = vmax.f32 %v588_v7, %v589_v8 }
 0x3f2   : > { %v591_v10 = vrot.slane %v590_v9, 2 }
 0x3f4   : > { %v592_v11 = vmax.f32 %v590_v9, %v591_v10 }
 0x3f6   : > { %v593_v12 = vrot.slane %v592_v11, 1 }
 0x3f8   : > { %v594_v13 = vmax.f32 %v592_v11, %v593_v12 }
 0x3fa   : > { %v595_v14 = vsub.f32 %v586_v6, %v594_v13 }
 0x3fc   : > { %v596_v15 = vmul.f32 1.442695, %v595_v14 }
 0x3fe   : > { %955 = vpow2.f32 %v596_v15 }
 0x408   : > { %v956_v16 = vpop.eup %955 }
 0x409   : > { %v598_v17 = vsel %vm587_vm4, %v956_v16, 0.0 }
 0x40a   : > { %v599_v18 = vrot.slane %v598_v17, 4 }
 0x40c   : > { %v600_v19 = vadd.f32 %v599_v18, %v598_v17 }
 0x40e   : > { %v601_v20 = vrot.slane %v600_v19, 2 }
 0x410   : > { %v602_v21 = vadd.f32 %v601_v20, %v600_v19 }
 0x412   : > { %v603_v22 = vrot.slane %v602_v21, 1 }
 0x414   : > { %v604_v23 = vadd.f32 %v603_v22, %v602_v21 }
 0x416   : > { %957 = vrcp.f32 %v604_v23 }
 0x420   : > { %v958_v24 = vpop.eup %957 }
 0x421   : > { %v606_v25 = vmul.f32 %v958_v24, %v956_v16 }
 0x423   : > { %609 = vperm.xlu1 %940, %v606_v25  }
 0x427   : > { %941 = vset.pattern.permute.xlu1 %v1133_v33 }
 0x4a2   : > { %v610_v26 = vpop.permute.xlu1 %609 }
 0x4a3   : > { %v612_v27 = vmul.f32 %v610_v26, %v575_v61 }
 0x4a5   : > { %v613_v28 = vrot.slane %v612_v27, 4 }
 0x4a7   : > { %v614_v29 = vadd.f32 %v613_v28, %v612_v27 }
 0x4a9   : > { %v615_v30 = vrot.slane %v614_v29, 2 }
 0x4ab   : > { %v616_v31 = vadd.f32 %v615_v30, %v614_v29 }
 0x4ad   : > { %v617_v32 = vrot.slane %v616_v31, 1 }
 0x4af   : > { %v618_v34 = vadd.f32 %v617_v32, %v616_v31 }
 0x4b1   : > { %v624_v36 = vadd.f32 %v622_v35, %v618_v34 }
 0x4b3   : > { %v838_v37 = vmul.f32 -1.442695, %v624_v36 }
 0x4b5   : > { %959 = vpow2.f32 %v838_v37 }
 0x4bf   : > { %v960_v38 = vpop.eup %959 }
 0x4c0   : > { %v628_v39 = vadd.f32 1.0, %v960_v38 }
 0x4c2   : > { %961 = vrcp.f32 %v628_v39 }
 0x4cc   : > { %v962_v33 = vpop.eup %961 }
 0x4cd   : > { %633 = vperm.xlu1 %941, %v962_v33   ;;  %v637_v40 = vsub.f32 1.0, %v962_v33 }
 0x4cf   : > { %640 = vperm.xlu0 %942, %v637_v40  }
 0x4d0   : > { %1034 = shalt.err (!%p1031_p9)
}
 0x4d1   : > { %s1035_s21 = scalar_lea.hbm %s1396_s10, 128  ;;  %s1039_s15 = scalar_lea.hbm %s1479_s7, 256 }
 0x4d2   : > { %p1036_p2 = scmp.ne.s32.totalorder %s1396_s10, %s1035_s21  ;;  %p1040_p11 = scmp.lt.u32.totalorder %s1396_s10, %s1479_s7 }
 0x4d3   : > { %p1041_p1 = scmp.lt.u32.totalorder %s1039_s15, %s1035_s21  ;;  %p1043_p6 = scmp.lt.u32.totalorder %s1035_s21, %s1396_s10 }
 0x4d4   : > { %p1037_p5 = pnand %p1036_p2, %p1274_p12 }
 0x4d5   : > { %p1042_p4 = por %p1041_p1, %p1040_p11 }
 0x4d6   : > { %p1038_p0 = pneg %p1037_p5 }
 0x4d7   : > { %p1044_p8 = por %p1043_p6, %p1042_p4 }
 0x4d9   : > { %p1045_p10 = pnand %p1044_p8, %p1038_p0 }
 0x4db   : > { %1048 = shalt.err (!%p1045_p10)
}
 0x4dc   : > { %873 = dma.vmem_to_hbm [thread:$0]  (%p1274_p12), %s668_s16, 128, %s1396_s10, %s649_s18   ;;  %v619_v42 = vadd.f32 %v618_v34, %v1350_v4 }
 0x4dd   : > { %s372_s19 = scalar_lea.vmem [#allocation8], %s1322_s26  ;;  %s1427_s11 = scalar_lea.hbm %s1480_s8, %s841_s13 }
 0x4de   : > { %s680_s17 = sshll.u32 %s372_s19, 4  ;;  %s654_s10 = scalar_lea.sflag [#allocation9], %s1319_s20  ;;  %s1429_s17 = int_to_ptr.vmem [resolvable:$true] %s680_s17 }
 0x4df   : > { %s1049_s16 = scalar_lea.vmem %s1429_s17, 128  ;;  %s1137_s26 = smov [#allocation8]  }
 0x4e0   : > { %p1050_p13 = scmp.ne.s32.totalorder %s1429_s17, %s1049_s16  ;;  %s1053_s9 = sshll.u32 %s1137_s26, 4  ;;  %s1054_s9 = int_to_ptr.vmem [resolvable:$false] %s1053_s9 }
 0x4e1   : > { %s1055_s18 = scalar_lea.vmem %s1054_s9, 256  ;;  %p1056_p9 = scmp.lt.s32.totalorder %s1429_s17, %s1054_s9 }
 0x4e2   : > { %p1051_p3 = pnand %p1050_p13, %p1274_p12  ;;  %p1057_p2 = scmp.lt.s32.totalorder %s1055_s18, %s1049_s16 }
 0x4e4   : > { %p1052_p7 = pneg %p1051_p3  ;;  %p1058_p5 = por %p1057_p2, %p1056_p9 }
 0x4e6   : > { %p1059_p0 = pnand %p1058_p5, %p1052_p7 }
 0x54c   : > { %v634_v41 = vpop.permute.xlu1 %633 }
 0x54d   : > { %v636_v44 = vmul.f32 %v634_v41, %v619_v42 }
 0x54e   : > { %v641_v43 = vpop.permute.xlu0 %640 }
 0x54f   : > { %v643_v45 = vmul.f32 %v641_v43, %v1350_v4 }
 0x551   : > { %v644_v46 = vadd.f32 %v643_v45, %v636_v44 }
 0x553   : > { %v645_v47 = vadd.f32 %v644_v46, %v1350_v4 }
 0x555   : > { %647 = vst.msk [vmem:[%s372_s19] sm:$0xff] %vm409_vm1, %v645_v47 }
 0x556   : > { %1062 = shalt.err (!%p1059_p0)
}
 0x557   : > { %s1063_s20 = scalar_lea.hbm %s1427_s11, 128  ;;  %s1067_s14 = scalar_lea.hbm %s1480_s8, 256 }
 0x558   : > { %p1064_p11 = scmp.ne.s32.totalorder %s1427_s11, %s1063_s20  ;;  %p1068_p6 = scmp.lt.u32.totalorder %s1427_s11, %s1480_s8 }
 0x559   : > { %p1069_p8 = scmp.lt.u32.totalorder %s1067_s14, %s1063_s20  ;;  %p1071_p13 = scmp.lt.u32.totalorder %s1063_s20, %s1427_s11 }
 0x55a   : > { %p1065_p1 = pnand %p1064_p11, %p1274_p12 }
 0x55b   : > { %p1070_p10 = por %p1069_p8, %p1068_p6 }
 0x55c   : > { %p1066_p4 = pneg %p1065_p1 }
 0x55d   : > { %p1072_p3 = por %p1071_p13, %p1070_p10 }
 0x55f   : > { %p1073_p7 = pnand %p1072_p3, %p1066_p4 }
 0x561   : > { %1076 = shalt.err (!%p1073_p7)
}
 0x562   : > { %874 = dma.vmem_to_hbm [thread:$0]  (%p1274_p12), %s1429_s17, 128, %s1427_s11, %s654_s10  }
 0x563 PF: > { %s692_s21 = sand.u32 1, %s1111_s27   ;;  %p1498_p9 = scmp.ne.s32.totalorder %s1487_s12, 0 }
 0x564   : > { %p1499_p2 = scmp.ge.s32.totalorder %s1123_s30, 2  ;;  %s693_s22 = scalar_lea.sflag [#allocation4], %s692_s21 }
 0x566   : > { %p886_p5 = pnand %p1499_p2, %p1498_p9 }
 0x568   : > { %1102 = dma.done.wait (!%p886_p5), %s693_s22, 128  }
 0x569   : > { %1104 = vsyncadd (!%p886_p5), %s693_s22, 4294967168  ;;  %s702_s16 = scalar_lea.sflag [#allocation9], %s692_s21 }
 0x56a   : > { %1106 = dma.done.wait (!%p886_p5), %s702_s16, 128  }
 0x56b   : > { %1108 = vsyncadd (!%p886_p5), %s702_s16, 4294967168  ;;  %s1500_s30 = sld [smem:[#allocation14_spill]]  ;;  %s1501_s27 = smov %s1115_s28 }
 0x56c   : > { %s1502_s28 = smov %s1119_s29  ;;  %s1503_s29 = smov %s1270_s23 }
 0x571   : > { %p26_p12 = scmp.ge.s32.totalorder %s1500_s30, 4  }
 0x573   :  { %28 = sbr.rel (!%p26_p12) target bundleno = 8 (0x8), region = 120 }
 0x57a   :  { %707 = vsyncpa [#allocation3], 1 }
 0x57b   :  { %709 = vsyncpa [#allocation3 + $0x1], 1 }
 0x57c   :  { %710 = vsyncpa [#allocation6], 1 }
 0x57d   :  { %711 = vsyncpa [#allocation4], 1 }
 0x57e   :  { %713 = vsyncpa [#allocation4 + $0x1], 1 }
 0x57f   :  { %714 = vsyncpa [#allocation9], 1 }
 0x580   :  { %716 = vsyncpa [#allocation9 + $0x1], 1 }

</bundles_post_ra>
